<compile_context>
chip_gen: v7x
topology: tpu7x:2x2x1
jax: 0.10.0
libtpu: 0.0.40
codegen_flags: <defaults>
</compile_context>

<pallas_src>
import jax
import jax.numpy as jnp
from jax.experimental import pallas as pl
from jax.experimental.pallas import tpu as pltpu


def _round_up(x, m):
    return (x + m - 1) // m * m


def _cdiv(a, b):
    return (a + b - 1) // b


def _deepsets_phi_scatter_kernel(batch_ref, x_ref, w1_ref, b1_ref, out_ref):
    """Per N-tile: phi = tanh(x @ w1 + b1); out[split] += one_hot(batch) @ phi."""
    i = pl.program_id(1)                       # position along reduction axis

    @pl.when(i == 0)
    def _zero():
        out_ref[...] = jnp.zeros_like(out_ref)

    # fc1 on this N-tile: bf16 MXU inputs, f32 accumulation, f32 bias.
    z = (jnp.dot(x_ref[...], w1_ref[...], preferred_element_type=jnp.float32)
         + b1_ref[...])                                           # (tN, 2Hp) f32
    # tanh in bf16 (EUP bf16 path on v6e/v7x; phi is consumed in bf16 anyway).
    phi = jnp.tanh(z.astype(jnp.bfloat16))                        # (tN, 2Hp) bf16

    # Scatter-sum via a per-tile one-hot (B_pad, tN) GEMM on the MXU.
    # Padded rows carry segment id -1, so they never match a real segment.
    seg = batch_ref[...]                                          # (1, tN) int32
    b_pad = out_ref.shape[1]
    tn = x_ref.shape[0]
    seg_ids = jax.lax.broadcasted_iota(jnp.int32, (b_pad, tn), 0)
    onehot = (seg_ids == seg).astype(jnp.bfloat16)                # (B_pad, tN)
    out_ref[0] += jnp.dot(onehot, phi, preferred_element_type=jnp.float32)


def deepsets_forward(x, batch, params, num_segments, *, tile_n=2048,
                     num_splits=2):
    """DeepSets forward.  x: (N, H) float, batch: (N,) int ids in [0, num_segments).

    Returns y.squeeze() (matches the PyTorch module: all size-1 dims dropped).
    """
    w1, b1, w2, b2 = params
    n, h = x.shape
    h2 = w1.shape[1]
    assert w1.shape == (h, h2) and w2.shape == (h2, h)

    h2_pad = _round_up(h2, 128)            # lane-dense 2H (MXU N / tanh lanes)
    b_pad = _round_up(num_segments, 16)    # native bf16 (16,128) sublane tile

    # --- N tiling: one tile for small sets, `tile_n`-row tiles otherwise ----
    if n > tile_n:
        tn = _round_up(tile_n, 128)        # keeps every BlockSpec dim legal
    else:
        tn = _round_up(n, 8)
    total_tiles = _cdiv(n, tn)
    n_splits = num_splits if total_tiles >= num_splits else 1
    tpp = _cdiv(total_tiles, n_splits)     # tiles per split
    n_pad = n_splits * tpp * tn

    # --- single O(N) wrapper copy: zero-pad fused into the bf16 cast --------
    # Padded rows are exact zeros and padded ids are -1 -> contribute nothing.
    # TODO(synk): for callers that already hold bf16 x, handle the ragged tail
    # in-kernel (mask phi rows) and drop this copy entirely.
    x_p = jnp.zeros((n_pad, h), jnp.bfloat16).at[:n].set(x.astype(jnp.bfloat16))
    batch_p = jnp.full((1, n_pad), -1, jnp.int32).at[0, :n].set(
        batch.astype(jnp.int32))
    w1_p = jnp.zeros((h, h2_pad), jnp.bfloat16).at[:, :h2].set(
        w1.astype(jnp.bfloat16))
    b1_p = jnp.zeros((1, h2_pad), jnp.float32).at[0, :h2].set(
        b1.astype(jnp.float32))

    partial = pl.pallas_call(
        _deepsets_phi_scatter_kernel,
        out_shape=jax.ShapeDtypeStruct((n_splits, b_pad, h2_pad), jnp.float32),
        grid_spec=pltpu.PrefetchScalarGridSpec(
            num_scalar_prefetch=0,
            grid=(n_splits, tpp),
            in_specs=[
                pl.BlockSpec((1, tn), lambda s, i: (0, s * tpp + i)),   # ids
                pl.BlockSpec((tn, h), lambda s, i: (s * tpp + i, 0)),   # x tile
                pl.BlockSpec((h, h2_pad), lambda s, i: (0, 0)),         # w1
                pl.BlockSpec((1, h2_pad), lambda s, i: (0, 0)),         # b1
            ],
            out_specs=pl.BlockSpec((1, b_pad, h2_pad), lambda s, i: (s, 0, 0)),
        ),
        compiler_params=pltpu.CompilerParams(
            dimension_semantics=("parallel", "arbitrary")),
    )(batch_p, x_p, w1_p, b1_p)

    # Tiny epilogue in plain JAX: cross-split reduce + rho = fc2 (f32, exact).
    sum_x = partial.sum(axis=0)[:num_segments, :h2]                  # (B, 2H)
    y = sum_x @ w2.astype(jnp.float32) + b2.astype(jnp.float32)      # (B, H)
    return jnp.squeeze(y)


def init_params(key, hidden_dim):
    """Deterministic init mimicking nn.Linear shapes (stored transposed: (in, out))."""
    k1, k2, k3, k4 = jax.random.split(key, 4)
    lim1 = 1.0 / jnp.sqrt(hidden_dim)
    lim2 = 1.0 / jnp.sqrt(2 * hidden_dim)
    w1 = jax.random.uniform(k1, (hidden_dim, 2 * hidden_dim), jnp.float32, -lim1, lim1)
    b1 = jax.random.uniform(k2, (2 * hidden_dim,), jnp.float32, -lim1, lim1)
    w2 = jax.random.uniform(k3, (2 * hidden_dim, hidden_dim), jnp.float32, -lim2, lim2)
    b2 = jax.random.uniform(k4, (hidden_dim,), jnp.float32, -lim2, lim2)
    return w1, b1, w2, b2


def deepsets_ref_f32(x, batch, params, num_segments):
    """Pure-f32 JAX reference (original module semantics)."""
    w1, b1, w2, b2 = params
    phi = jnp.tanh(x @ w1 + b1)
    sum_x = jax.ops.segment_sum(phi, batch, num_segments=num_segments)
    return jnp.squeeze(sum_x @ w2 + b2)


def deepsets_ref_matched(x, batch, params, num_segments):
    """Matched precision: bf16 GEMM inputs / f32 accum, bf16 tanh, f32 fc2."""
    w1, b1, w2, b2 = params
    bf = jnp.bfloat16
    z = jnp.dot(x.astype(bf), w1.astype(bf),
                preferred_element_type=jnp.float32) + b1
    phi = jnp.tanh(z.astype(bf)).astype(jnp.float32)
    sum_x = jax.ops.segment_sum(phi, batch, num_segments=num_segments)
    return jnp.squeeze(sum_x @ w2 + b2)


if __name__ == "__main__":
    key = jax.random.PRNGKey(0)
    k_x, k_p, k_x2, k_b2 = jax.random.split(key, 4)

    hidden_dim = 32
    params = init_params(k_p, hidden_dim)

    # --- small test (typical module usage) ----------------------------------
    n_nodes, num_segments = 8, 2
    x = jax.random.normal(k_x, (n_nodes, hidden_dim), jnp.float32)
    batch = jnp.array([0, 0, 0, 1, 1, 1, 1, 1], dtype=jnp.int32)

    y = jax.block_until_ready(deepsets_forward(x, batch, params, num_segments))
    assert y.shape == (num_segments, hidden_dim)
    y_m = deepsets_ref_matched(x, batch, params, num_segments)
    y_f = deepsets_ref_f32(x, batch, params, num_segments)
    assert jnp.allclose(y, y_m, atol=3e-2, rtol=3e-2), "mismatch vs matched-precision ref"
    assert jnp.allclose(y, y_f, atol=1e-1, rtol=1e-1), "mismatch vs f32 ref"

    # --- larger test: exercises multi-tile accumulation + the 2-way split ---
    n_big, segs_big = 1300, 5
    x2 = jax.random.normal(k_x2, (n_big, hidden_dim), jnp.float32)
    batch2 = jax.random.randint(k_b2, (n_big,), 0, segs_big, dtype=jnp.int32)
    y2 = jax.block_until_ready(
        deepsets_forward(x2, batch2, params, segs_big, tile_n=512, num_splits=2))
    assert y2.shape == (segs_big, hidden_dim)
    y2_m = deepsets_ref_matched(x2, batch2, params, segs_big)
    assert jnp.allclose(y2, y2_m, atol=1e-1, rtol=5e-2), "mismatch vs matched ref (tiled)"
    y2_f = deepsets_ref_f32(x2, batch2, params, segs_big)
    assert jnp.allclose(y2, y2_f, atol=3e-1, rtol=1e-1), "mismatch vs f32 ref (tiled)"

    print("KERNEL_OK")
</pallas_src>

<mosaic_0001>
module attributes {stable_mosaic.version = 11 : i64} {
  func.func @_deepsets_phi_scatter_kernel(%arg0: i32, %arg1: i32, %arg2: memref<1x8xi32, #tpu.memory_space<vmem>>, %arg3: memref<8x32xbf16, #tpu.memory_space<vmem>>, %arg4: memref<32x128xbf16, #tpu.memory_space<vmem>>, %arg5: memref<1x128xf32, #tpu.memory_space<vmem>>, %arg6: memref<1x16x128xf32, #tpu.memory_space<vmem>>) attributes {dimension_semantics = [#tpu.dimension_semantics<parallel>, #tpu.dimension_semantics<arbitrary>], iteration_bounds = array<i64: 1, 1>, scalar_prefetch = 0 : i64, scratch_operands = 0 : i64, tpu.core_type = #tpu.core_type<tc>, window_params = [{transform_indices = @transform_0, window_bounds = array<i64: 1, 8>}, {transform_indices = @transform_1, window_bounds = array<i64: 8, 32>}, {pipeline_mode = #tpu.pipeline_mode<synchronous>, transform_indices = @transform_2, window_bounds = array<i64: 32, 128>}, {pipeline_mode = #tpu.pipeline_mode<synchronous>, transform_indices = @transform_3, window_bounds = array<i64: 1, 128>}, {transform_indices = @transform_4, window_bounds = array<i64: 1, 16, 128>}]} {
    %c0_i32 = arith.constant 0 : i32
    %0 = arith.cmpi eq, %arg1, %c0_i32 : i32
    %1 = arith.extui %0 : i1 to i32
    %c0_i32_0 = arith.constant 0 : i32
    %2 = arith.cmpi ne, %1, %c0_i32_0 : i32
    scf.if %2 {
      %cst_15 = arith.constant 0.000000e+00 : f32
      %25 = vector.broadcast %cst_15 : f32 to vector<1x16x128xf32>
      %c0_16 = arith.constant 0 : index
      %c0_17 = arith.constant 0 : index
      %c0_18 = arith.constant 0 : index
      %26 = vector.load %arg6[%c0_16, %c0_17, %c0_18] : memref<1x16x128xf32, #tpu.memory_space<vmem>>, vector<1x16x128xf32>
      tpu.vector_store %arg6[%c0_16, %c0_17, %c0_18], %25 {strides = array<i32>} : memref<1x16x128xf32, #tpu.memory_space<vmem>>, vector<1x16x128xf32>,
    } else {
    }
    %c0 = arith.constant 0 : index
    %c0_1 = arith.constant 0 : index
    %3 = vector.load %arg3[%c0, %c0_1] : memref<8x32xbf16, #tpu.memory_space<vmem>>, vector<8x32xbf16>
    %c0_2 = arith.constant 0 : index
    %c0_3 = arith.constant 0 : index
    %4 = vector.load %arg4[%c0_2, %c0_3] : memref<32x128xbf16, #tpu.memory_space<vmem>>, vector<32x128xbf16>
    %cst = arith.constant dense<0.000000e+00> : vector<8x128xf32>
    %5 = tpu.matmul %3, %4, %cst {dimension_numbers = #tpu.dot_dimension_numbers<[1], [0], [0], [1], [0, 0, 1, 1], [], []>} : vector<8x32xbf16>, vector<32x128xbf16>, vector<8x128xf32> -> vector<8x128xf32>
    %c0_4 = arith.constant 0 : index
    %c0_5 = arith.constant 0 : index
    %6 = vector.load %arg5[%c0_4, %c0_5] : memref<1x128xf32, #tpu.memory_space<vmem>>, vector<1x128xf32>
    %7 = vector.broadcast %6 : vector<1x128xf32> to vector<8x128xf32>
    %8 = arith.addf %5, %7 : vector<8x128xf32>
    %9 = arith.truncf %8 : vector<8x128xf32> to vector<8x128xbf16>
    %10 = math.tanh %9 : vector<8x128xbf16>
    %c0_6 = arith.constant 0 : index
    %c0_7 = arith.constant 0 : index
    %11 = vector.load %arg2[%c0_6, %c0_7] : memref<1x8xi32, #tpu.memory_space<vmem>>, vector<1x8xi32>
    %12 = tpu.iota {dimensions = array<i32: 0>} : vector<16x8xi32>
    %13 = vector.broadcast %11 : vector<1x8xi32> to vector<16x8xi32>
    %14 = arith.cmpi eq, %12, %13 : vector<16x8xi32>
    %15 = arith.extui %14 : vector<16x8xi1> to vector<16x8xi32>
    %16 = arith.sitofp %15 : vector<16x8xi32> to vector<16x8xf32>
    %17 = arith.truncf %16 : vector<16x8xf32> to vector<16x8xbf16>
    %c0_8 = arith.constant 0 : index
    %c0_9 = arith.constant 0 : index
    %c0_10 = arith.constant 0 : index
    %18 = vector.load %arg6[%c0_8, %c0_9, %c0_10] : memref<1x16x128xf32, #tpu.memory_space<vmem>>, vector<1x16x128xf32>
    %19 = vector.shape_cast %18 : vector<1x16x128xf32> to vector<16x128xf32>
    %cst_11 = arith.constant dense<0.000000e+00> : vector<16x128xf32>
    %20 = tpu.matmul %17, %10, %cst_11 {dimension_numbers = #tpu.dot_dimension_numbers<[1], [0], [0], [1], [0, 0, 1, 1], [], []>} : vector<16x8xbf16>, vector<8x128xbf16>, vector<16x128xf32> -> vector<16x128xf32>
    %21 = arith.addf %19, %20 : vector<16x128xf32>
    %c0_12 = arith.constant 0 : index
    %c0_13 = arith.constant 0 : index
    %c0_14 = arith.constant 0 : index
    %22 = vector.load %arg6[%c0_12, %c0_13, %c0_14] : memref<1x16x128xf32, #tpu.memory_space<vmem>>, vector<1x16x128xf32>
    %23 = vector.shape_cast %22 : vector<1x16x128xf32> to vector<16x128xf32>
    %24 = vector.shape_cast %21 : vector<16x128xf32> to vector<1x16x128xf32>
    tpu.vector_store %arg6[%c0_12, %c0_13, %c0_14], %24 {strides = array<i32>} : memref<1x16x128xf32, #tpu.memory_space<vmem>>, vector<1x16x128xf32>,
    return
  }
  func.func @transform_0(%arg0: i32, %arg1: i32) -> (i32, i32) {
    %c1_i32 = arith.constant 1 : i32
    %0 = arith.muli %arg0, %c1_i32 : i32
    %1 = arith.addi %0, %arg1 : i32
    %c0_i32 = arith.constant 0 : i32
    %c0_i32_0 = arith.constant 0 : i32
    return %c0_i32, %1 : i32, i32
  }
  func.func @transform_1(%arg0: i32, %arg1: i32) -> (i32, i32) {
    %c1_i32 = arith.constant 1 : i32
    %0 = arith.muli %arg0, %c1_i32 : i32
    %1 = arith.addi %0, %arg1 : i32
    %c0_i32 = arith.constant 0 : i32
    %c0_i32_0 = arith.constant 0 : i32
    return %1, %c0_i32 : i32, i32
  }
  func.func @transform_2(%arg0: i32, %arg1: i32) -> (i32, i32) {
    %c0_i32 = arith.constant 0 : i32
    %c0_i32_0 = arith.constant 0 : i32
    %c0_i32_1 = arith.constant 0 : i32
    return %c0_i32, %c0_i32_0 : i32, i32
  }
  func.func @transform_3(%arg0: i32, %arg1: i32) -> (i32, i32) {
    %c0_i32 = arith.constant 0 : i32
    %c0_i32_0 = arith.constant 0 : i32
    %c0_i32_1 = arith.constant 0 : i32
    return %c0_i32, %c0_i32_0 : i32, i32
  }
  func.func @transform_4(%arg0: i32, %arg1: i32) -> (i32, i32, i32) {
    %c0_i32 = arith.constant 0 : i32
    %c0_i32_0 = arith.constant 0 : i32
    %c0_i32_1 = arith.constant 0 : i32
    return %arg0, %c0_i32, %c0_i32_0 : i32, i32, i32
  }
}

</mosaic_0001>

<bundles_post_ra>
// kernel: tpu_custom_call.1
= control target key start
LH: loop header
LB: loop body
LE: loop exit
PB: predicated region body
PF: predicated region fallthrough
CT: control target
= control target key end

     0   :  { %9 = vsyncpa [#allocation3], 0  ;;  %s449_s0 = inlined_call_operand.hbm [shape: s32[1,8], index: 0, kind: input, shape index: {}]   ;;  %s450_s1 = inlined_call_operand.hbm [shape: bf16[8,32], index: 1, kind: input, shape index: {}]   ;;  %s451_s2 = inlined_call_operand.hbm [shape: bf16[32,128], index: 2, kind: input, shape index: {}]   ;;  %s452_s3 = inlined_call_operand.vmem [shape: f32[1,128], index: 3, kind: input, shape index: {}]   ;;  %s453_s4 = inlined_call_operand.hbm [shape: f32[1,16,128], index: 4, kind: output, shape index: {}]  }
   0x1   :  { %10 = vsyncpa [#allocation6], 0 }
   0x2   :  { %11 = vsyncpa [#allocation4], 0  ;;  %s363_s15 = smov [#allocation5]   ;;  %s364_s17 = smov [#allocation2]  }
   0x3   :  { %s34_s16 = sshll.u32 %s363_s15, 4  ;;  %s21_s18 = sshll.u32 %s364_s17, 4  ;;  %s35_s16 = int_to_ptr.vmem [resolvable:$true] %s34_s16  ;;  %s22_s18 = int_to_ptr.vmem [resolvable:$true] %s21_s18 }
   0x4   :  { %s269_s21 = scalar_lea.hbm %s450_s1, 64 }
   0x5   :  { %p270_p0 = scmp.ne.s32.totalorder %s450_s1, %s269_s21  ;;  %p273_p1 = scmp.lt.u32.totalorder %s269_s21, %s450_s1 }
   0x7   :  { %p275_p2 = pnand %p273_p1, %p270_p0 }
   0x9   :  { %278 = shalt.err (!%p275_p2)
}
   0xa   :  { %s279_s26 = scalar_lea.vmem %s35_s16, 64  ;;  %p284_p4 = scmp.lt.s32.totalorder %s35_s16, %s35_s16 }
   0xb   :  { %p280_p3 = scmp.ne.s32.totalorder %s35_s16, %s279_s26  ;;  %p285_p5 = scmp.lt.s32.totalorder %s279_s26, %s279_s26 }
   0xd   :  { %p286_p6 = por %p285_p5, %p284_p4 }
   0xf   :  { %p287_p7 = pnand %p286_p6, %p280_p3 }
  0x11   :  { %290 = shalt.err (!%p287_p7)
}
  0x12   :  { %37 = dma.hbm_to_vmem [thread:$0]  %s450_s1, 64, %s35_s16, [#allocation6]  }
  0x13   :  { %s291_s5 = scalar_lea.hbm %s449_s0, 16 }
  0x14   :  { %p292_p8 = scmp.ne.s32.totalorder %s449_s0, %s291_s5  ;;  %p295_p9 = scmp.lt.u32.totalorder %s291_s5, %s449_s0 }
  0x16   :  { %p297_p10 = pnand %p295_p9, %p292_p8 }
  0x18   :  { %300 = shalt.err (!%p297_p10)
}
  0x19   :  { %s301_s10 = scalar_lea.vmem %s22_s18, 16  ;;  %s305_s11 = scalar_lea.vmem %s22_s18, 32 }
  0x1a   :  { %p302_p11 = scmp.ne.s32.totalorder %s22_s18, %s301_s10  ;;  %p306_p12 = scmp.lt.s32.totalorder %s22_s18, %s22_s18 }
  0x1b   :  { %p307_p13 = scmp.lt.s32.totalorder %s305_s11, %s301_s10 }
  0x1d   :  { %p308_p0 = por %p307_p13, %p306_p12 }
  0x1f   :  { %p309_p1 = pnand %p308_p0, %p302_p11 }
  0x21   :  { %312 = shalt.err (!%p309_p1)
}
  0x22   :  { %24 = dma.hbm_to_vmem [thread:$0]  %s449_s0, 16, %s22_s18, [#allocation3]  }
  0x23   :  { %s365_s13 = smov [#allocation7]   ;;  %s313_s17 = scalar_lea.hbm %s451_s2, 256 }
  0x24   :  { %s43_s14 = sshll.u32 %s365_s13, 4  ;;  %p314_p2 = scmp.ne.s32.totalorder %s451_s2, %s313_s17  ;;  %s44_s14 = int_to_ptr.vmem [resolvable:$true] %s43_s14 }
  0x25   :  { %p317_p3 = scmp.lt.u32.totalorder %s313_s17, %s451_s2 }
  0x27   :  { %p319_p4 = pnand %p317_p3, %p314_p2 }
  0x29   :  { %322 = shalt.err (!%p319_p4)
}
  0x2a   :  { %s323_s23 = scalar_lea.vmem %s44_s14, 256  ;;  %p328_p6 = scmp.lt.s32.totalorder %s44_s14, %s44_s14 }
  0x2b   :  { %p324_p5 = scmp.ne.s32.totalorder %s44_s14, %s323_s23  ;;  %p329_p7 = scmp.lt.s32.totalorder %s323_s23, %s323_s23 }
  0x2d   :  { %p330_p8 = por %p329_p7, %p328_p6 }
  0x2f   :  { %p331_p9 = pnand %p330_p8, %p324_p5 }
  0x31   :  { %334 = shalt.err (!%p331_p9)
}
  0x32   :  { %s366_s0 = smov 64   ;;  %s367_s18 = smov 4  }
  0x33   :  { %49 = dma.hbm_to_vmem [thread:$0]  %s451_s2, 256, %s44_s14, [#allocation6], %s366_s0, %s366_s0, %s367_s18  }
  0x34   :  { %357 = dma.done.wait [#allocation3], 16  }
  0x35   :  { %358 = vsyncadd [#allocation3], 4294967280 }
  0x36   :  { %359 = dma.done.wait [#allocation6], 320  }
  0x37   :  { %360 = vsyncadd [#allocation6], 4294966976  ;;  %v368_v0 = vmov 0.0   ;;  %vm369_vm0 = vmmov 0   ;;  %v265_v1 = vld [vmem:[#allocation7] sm:$0xff]   ;;  %v266_v2 = vld [vmem:[#allocation7 + $0x8] sm:$0xff]   ;;  %v141_v5 = vlaneseq }
  0x38   :  { %241 = vmatprep.subr.bf16.mxu0 %v368_v0  ;;  %245 = vmatprep.mubr.msk.bf16.mxu0 %vm369_vm0, %v368_v0  ;;  %v70_v3 = vld [vmem:[#allocation5] sm:$0xf]  ;;  %vm94_vm1 = vcmask 261120   ;;  %v228_v4 = vld [vmem:[%s452_s3] ss:$0 sm:$0xff]  ;;  %vm161_vm4 = vcmask 1043456  }
  0x39   :  { %249 = vmatprep.subr.bf16.mxu1 %v368_v0  ;;  %251 = vmatprep.mubr.msk.bf16.mxu1 %vm369_vm0, %v368_v0  ;;  %v142_v12 = vshrl.u32 %v141_v5, 7  ;;  %v232_v14 = vld [vmem:[#allocation2] ss:$0 sm:$0xff]  ;;  %vm157_vm5 = vcmask 64512   ;;  %s370_s3 = smov [#allocation8]  }
  0x3a   :  { %242 = vmatpush3.bf16.msra.mxu0 %v265_v1  ;;  %s215_s27 = sshll.u32 %s370_s3, 4  ;;  %s216_s27 = int_to_ptr.vmem [resolvable:$true] %s215_s27 }
  0x3b   :  { %243 = vmatprep.subr.bf16.mxu0 %v368_v0  ;;  %v143_v13 = vadd.s32 8, %v142_v12  ;;  %vm148_vm2 = vcmp.eq.s32.totalorder %v142_v12, %v232_v14  ;;  %s335_s28 = scalar_lea.vmem %s216_s27, 256  ;;  %p340_p11 = scmp.lt.s32.totalorder %s216_s27, %s216_s27 }
  0x3c   :  { %v233_v15 = vsel %vm148_vm2, 1.0, %v368_v0  ;;  %p336_p10 = scmp.ne.s32.totalorder %s216_s27, %s335_s28  ;;  %p341_p12 = scmp.lt.s32.totalorder %s335_s28, %s335_s28 }
  0x3d   :  { %vm149_vm3 = vcmp.eq.s32.totalorder %v143_v13, %v232_v14 }
  0x3e   :  { %244 = vmatpush3.bf16.msra.mxu0 %v266_v2  ;;  %v234_v16 = vsel %vm149_vm3, 1.0, %v368_v0  ;;  %p342_p13 = por %p341_p12, %p340_p11 }
  0x3f   :  { %v154_v19 = vpack.c.bf16 %v234_v16, %v233_v15 }
  0x40   :  { %p343_p0 = pnand %p342_p13, %p336_p10 }
  0x41   :  { %246 = vmatmul.mubr.msk.bf16.vlgmr.msra.gmra.mrb[0].mxu0 %vm94_vm1, %v70_v3 }
 0x114   :  { %v132_v6 = vpop.f32.mrb[0].mxu0 }
 0x115   :  { %v133_v7 = vadd.f32 %v228_v4, %v132_v6  ;;  %v247_v8 = vpop.f32.mrb[1].mxu0 }
 0x116   :  { %v135_v9 = vpop.f32.mrb[2].mxu0 }
 0x117   :  { %v138_v10 = vpack.c.bf16 %v133_v7, %v133_v7  ;;  %v248_v11 = vpop.f32.mrb[3].mxu0 }
 0x119   :  { %267 = vtanh.bf16 %v138_v10 }
 0x124   :  { %v268_v17 = vpop.eup %267 }
 0x125   :  { %v163_v18 = vsel %vm161_vm4, %v268_v17, 0 }
 0x126   :  { %250 = vmatpush3.bf16.msra.mxu1 %v163_v18 }
 0x129   :  { %252 = vmatmul.mubr.msk.bf16.vlgmr.msra.gmra.mrb[0].mxu1 %vm157_vm5, %v154_v19 }
 0x1fc   :  { %v199_v20 = vpop.f32.mrb[0].mxu1 }
 0x1fd   :  { %v253_v21 = vpop.f32.mrb[1].mxu1  ;;  %208 = vst [vmem:[#allocation8] sm:$0xff] %v199_v20 }
 0x1fe   :  { %v202_v22 = vpop.f32.mrb[2].mxu1 }
 0x1ff   :  { %v254_v23 = vpop.f32.mrb[3].mxu1  ;;  %209 = vst [vmem:[#allocation8 + $0x8] sm:$0xff] %v202_v22 }
 0x200   :  { %346 = shalt.err (!%p343_p0)
}
 0x201   :  { %s347_s5 = scalar_lea.hbm %s453_s4, 256 }
 0x202   :  { %p348_p1 = scmp.ne.s32.totalorder %s453_s4, %s347_s5  ;;  %p351_p2 = scmp.lt.u32.totalorder %s347_s5, %s453_s4 }
 0x204   :  { %p353_p3 = pnand %p351_p2, %p348_p1 }
 0x206   :  { %356 = shalt.err (!%p353_p3)
}
 0x207   :  { %s371_s10 = smov 128   ;;  %s372_s11 = smov 8  }
 0x208   :  { %221 = dma.vmem_to_hbm [thread:$0]  %s216_s27, 256, %s453_s4, [#allocation4], %s371_s10, %s371_s10, %s372_s11  }
 0x209   :  { %361 = dma.done.wait [#allocation4], 256  }
 0x20a   :  { %362 = vsyncadd [#allocation4], 4294967040 }
 0x20b   :  { %225 = vsyncpa [#allocation3], 1 }
 0x20c   :  { %226 = vsyncpa [#allocation6], 1 }
 0x20d   :  { %227 = vsyncpa [#allocation4], 1 }

</bundles_post_ra>
